<compile_context>
chip_gen: v5e
topology: v5e:2x2
jax: 0.10.0
libtpu: 0.0.40
codegen_flags: <defaults>
</compile_context>

<pallas_src>
import functools

import jax
import jax.numpy as jnp
from jax import lax
from jax.experimental import pallas as pl
from jax.experimental.pallas import tpu as pltpu


# ----------------------------------------------------------------------------
# helpers
# ----------------------------------------------------------------------------
def _round_up(x, m):
    return ((x + m - 1) // m) * m


def _lane_tile(n, target):
    """Tile size: multiple of 128, <= target when possible, never the whole
    (unpadded) matrix for large n.  The wrapper pads n up to a multiple."""
    return max(128, min(target, _round_up(n, 128)))


def _cparams(sem):
    # Explicit scoped-VMEM limit: safe on v5e/v6e (128 MiB physical) and within
    # v7x's 64 MiB; per-step buffers are bounded by the K-tiling anyway.
    return pltpu.CompilerParams(dimension_semantics=sem,
                                vmem_limit_bytes=48 * 1024 * 1024)


# ----------------------------------------------------------------------------
# kernels
# ----------------------------------------------------------------------------
def _matmul_kernel(lhs_ref, rhs_ref, out_ref):
    """out_tile = lhs_tile @ rhs (rhs fully VMEM-resident)."""
    out_ref[...] = jnp.dot(lhs_ref[...], rhs_ref[...],
                           preferred_element_type=jnp.float32).astype(out_ref.dtype)


def _adj_matmul_kernel(adj_ref, h_ref, out_ref, acc_ref):
    """K-tiled: out_row_tile = sum_k adj[i,k] @ H[k]."""
    k = pl.program_id(1)

    @pl.when(k == 0)
    def _():
        acc_ref[...] = jnp.zeros_like(acc_ref)

    acc_ref[...] += jnp.dot(adj_ref[...], h_ref[...],
                            preferred_element_type=jnp.float32)

    @pl.when(k == pl.num_programs(1) - 1)
    def _():
        out_ref[...] = acc_ref[...].astype(out_ref.dtype)


def _gcn_fused_kernel(adj_ref, h_ref, w2_ref, out_ref, acc_ref):
    """K-tiled GCN layer + next transform: out = relu(adj @ H) @ W2."""
    k = pl.program_id(1)

    @pl.when(k == 0)
    def _():
        acc_ref[...] = jnp.zeros_like(acc_ref)

    acc_ref[...] += jnp.dot(adj_ref[...], h_ref[...],
                            preferred_element_type=jnp.float32)

    @pl.when(k == pl.num_programs(1) - 1)
    def _():
        hidden = jnp.maximum(acc_ref[...], 0.0).astype(w2_ref.dtype)
        out_ref[...] = jnp.dot(hidden, w2_ref[...],
                               preferred_element_type=jnp.float32
                               ).astype(out_ref.dtype)


def _pred_a_kernel(z_ref, w_ref, b_ref, out_ref):
    """Row x column tiled: A_pred_tile = sigmoid(Z_s_tile @ W_col_tile + b)."""
    logits = jnp.dot(z_ref[...], w_ref[...],
                     preferred_element_type=jnp.float32) + b_ref[...]
    out_ref[...] = jax.nn.sigmoid(logits).astype(out_ref.dtype)


def _heads_kernel(za_ref, zx_ref, wrx_ref, brx_ref, wsa_ref, wsx_ref, bs_ref,
                  x_out_ref, s_out_ref):
    """Fused reconst_X + pred_s sharing one row-tile pass over Z_a / Z_x.

    Padded columns of the softmax are masked by -1e30 pre-baked into bs."""
    # reconst_X: [Z_x | S] @ W_rx + b_rx   (S packed into row h of wrx)
    x = jnp.dot(zx_ref[...], wrx_ref[...],
                preferred_element_type=jnp.float32) + brx_ref[...]
    x_out_ref[...] = x.astype(x_out_ref.dtype)

    # pred_s: softmax([Z_a | Z_x] @ W_s + b_s)
    logits = (jnp.dot(za_ref[...], wsa_ref[...], preferred_element_type=jnp.float32)
              + jnp.dot(zx_ref[...], wsx_ref[...], preferred_element_type=jnp.float32)
              + bs_ref[...])
    m = jnp.max(logits, axis=-1, keepdims=True)
    e = jnp.exp(logits - m)
    denom = jnp.sum(e, axis=-1, keepdims=True)
    s_out_ref[...] = (e * pl.reciprocal(denom, approx=True)).astype(s_out_ref.dtype)


# ----------------------------------------------------------------------------
# pallas_call wrappers
# ----------------------------------------------------------------------------
def _row_matmul(lhs, rhs, *, out_dtype, tm):
    n, k = lhs.shape
    _, m = rhs.shape
    return pl.pallas_call(
        _matmul_kernel,
        out_shape=jax.ShapeDtypeStruct((n, m), out_dtype),
        grid_spec=pltpu.PrefetchScalarGridSpec(
            num_scalar_prefetch=0,
            grid=(n // tm,),
            in_specs=[pl.BlockSpec((tm, k), lambda i: (i, 0)),
                      pl.BlockSpec((k, m), lambda i: (0, 0))],
            out_specs=pl.BlockSpec((tm, m), lambda i: (i, 0)),
        ),
        compiler_params=_cparams(("parallel",)),
    )(lhs, rhs)


def _adj_matmul(adj, h, *, out_dtype, tm, tk):
    n, _ = adj.shape
    _, hd = h.shape
    return pl.pallas_call(
        _adj_matmul_kernel,
        out_shape=jax.ShapeDtypeStruct((n, hd), out_dtype),
        grid_spec=pltpu.PrefetchScalarGridSpec(
            num_scalar_prefetch=0,
            grid=(n // tm, n // tk),
            in_specs=[pl.BlockSpec((tm, tk), lambda i, k: (i, k)),
                      pl.BlockSpec((tk, hd), lambda i, k: (k, 0))],
            out_specs=pl.BlockSpec((tm, hd), lambda i, k: (i, 0)),
            scratch_shapes=[pltpu.VMEM((tm, hd), jnp.float32)],
        ),
        compiler_params=_cparams(("parallel", "arbitrary")),
    )(adj, h)


def _gcn_fused(adj, h, w2, *, out_dtype, tm, tk):
    n, _ = adj.shape
    _, hd = h.shape
    _, ho = w2.shape
    return pl.pallas_call(
        _gcn_fused_kernel,
        out_shape=jax.ShapeDtypeStruct((n, ho), out_dtype),
        grid_spec=pltpu.PrefetchScalarGridSpec(
            num_scalar_prefetch=0,
            grid=(n // tm, n // tk),
            in_specs=[pl.BlockSpec((tm, tk), lambda i, k: (i, k)),
                      pl.BlockSpec((tk, hd), lambda i, k: (k, 0)),
                      pl.BlockSpec((hd, ho), lambda i, k: (0, 0))],
            out_specs=pl.BlockSpec((tm, ho), lambda i, k: (i, 0)),
            scratch_shapes=[pltpu.VMEM((tm, hd), jnp.float32)],
        ),
        compiler_params=_cparams(("parallel", "arbitrary")),
    )(adj, h, w2)


def _pred_a(z, w, b, *, out_dtype, tm, tn):
    n, hd = z.shape
    _, ncp = w.shape
    return pl.pallas_call(
        _pred_a_kernel,
        out_shape=jax.ShapeDtypeStruct((n, ncp), out_dtype),
        grid_spec=pltpu.PrefetchScalarGridSpec(
            num_scalar_prefetch=0,
            grid=(n // tm, ncp // tn),
            in_specs=[pl.BlockSpec((tm, hd), lambda i, j: (i, 0)),
                      pl.BlockSpec((hd, tn), lambda i, j: (0, j)),
                      pl.BlockSpec((1, tn), lambda i, j: (0, j))],
            out_specs=pl.BlockSpec((tm, tn), lambda i, j: (i, j)),
        ),
        compiler_params=_cparams(("parallel", "parallel")),
    )(z, w, b)


def _heads(z_a, z_x, wrx, brx, wsa, wsx, bs, *, tm):
    n, hd = z_a.shape
    fp = wrx.shape[1]
    sp = wsa.shape[1]
    return pl.pallas_call(
        _heads_kernel,
        out_shape=(jax.ShapeDtypeStruct((n, fp), jnp.float32),
                   jax.ShapeDtypeStruct((n, sp), jnp.float32)),
        grid_spec=pltpu.PrefetchScalarGridSpec(
            num_scalar_prefetch=0,
            grid=(n // tm,),
            in_specs=[pl.BlockSpec((tm, hd), lambda i: (i, 0)),
                      pl.BlockSpec((tm, hd), lambda i: (i, 0)),
                      pl.BlockSpec((hd, fp), lambda i: (0, 0)),
                      pl.BlockSpec((1, fp), lambda i: (0, 0)),
                      pl.BlockSpec((hd, sp), lambda i: (0, 0)),
                      pl.BlockSpec((hd, sp), lambda i: (0, 0)),
                      pl.BlockSpec((1, sp), lambda i: (0, 0))],
            out_specs=[pl.BlockSpec((tm, fp), lambda i: (i, 0)),
                       pl.BlockSpec((tm, sp), lambda i: (i, 0))],
        ),
        compiler_params=_cparams(("parallel",)),
    )(z_a, z_x, wrx, brx, wsa, wsx, bs)


# ----------------------------------------------------------------------------
# CFDA.forward
# ----------------------------------------------------------------------------
def cfda_forward(X, adj, sen_idx, params, *, s_num=4,
                 row_tile=256, k_tile=256, col_tile=512,
                 a_pred_dtype=jnp.float32):
    """Returns (A_pred, X_pred, S_agg_pred) like CFDA.forward(X, sen_idx)."""
    n, f = X.shape
    h = params["w_base"].shape[1]

    f32, bf16 = jnp.float32, jnp.bfloat16

    # --- tile / padded-dim selection (padding, never whole-matrix fallback) --
    tm = _lane_tile(n, row_tile)            # row tile (adj rows / output rows)
    tk = tm if k_tile is None else _lane_tile(n, min(k_tile, tm))  # == tm
    np_ = _round_up(n, tm)                   # padded node count (rows & K dim)
    tn = _lane_tile(n, col_tile)            # pred_a output-column tile
    ncp = _round_up(n, tn)                  # padded pred_a output columns
    fp = _round_up(f, 128)                  # padded feature dim
    hp = _round_up(h + 1, 128)              # padded hidden dim (+1 slot for S)
    sp = _round_up(s_num, 128)              # padded s_num dim

    # --- sensitive column and zeroed features, zero-padded to tile multiples -
    S = X[:, sen_idx].astype(f32)                       # (n,)
    X_ns = X.at[:, sen_idx].set(0.0).astype(f32)
    x_p = jnp.pad(X_ns, ((0, np_ - n), (0, fp - f))).astype(bf16)
    adj_p = jnp.pad(adj.astype(f32), ((0, np_ - n), (0, np_ - n))).astype(bf16)

    # --- fused-branch encoder weights -----------------------------------------
    # T1 = X_ns @ [W_base | W_base_x]   (one matmul for both branches)
    wb_cat = jnp.zeros((fp, 2 * hp), f32)
    wb_cat = wb_cat.at[:f, :h].set(params["w_base"].astype(f32))
    wb_cat = wb_cat.at[:f, hp:hp + h].set(params["w_base_x"].astype(f32))
    wb_cat = wb_cat.astype(bf16)
    # second transform: block-diagonal diag(W_mean, W_mean_x)
    w2 = jnp.zeros((2 * hp, 2 * hp), f32)
    w2 = w2.at[:h, :h].set(params["w_mean"].astype(f32))
    w2 = w2.at[hp:hp + h, hp:hp + h].set(params["w_mean_x"].astype(f32))
    w2 = w2.astype(bf16)

    # --- head weights: S-row packed into row h of the padded Z weight --------
    w_a = params["w_a"].astype(f32)                      # (h+1, n)
    wz_a = jnp.zeros((hp, ncp), f32)
    wz_a = wz_a.at[:h, :n].set(w_a[:h]).at[h, :n].set(w_a[h]).astype(bf16)
    b_a = jnp.zeros((1, ncp), f32).at[0, :n].set(params["b_a"].astype(f32))

    w_rx = params["w_rx"].astype(f32)                    # (h+1, f)
    wz_rx = jnp.zeros((hp, fp), f32)
    wz_rx = wz_rx.at[:h, :f].set(w_rx[:h]).at[h, :f].set(w_rx[h]).astype(bf16)
    b_rx = jnp.zeros((1, fp), f32).at[0, :f].set(params["b_rx"].astype(f32))

    w_s = params["w_s"].astype(f32)                      # (2h, s_num)
    ws_a = jnp.zeros((hp, sp), f32).at[:h, :s_num].set(w_s[:h]).astype(bf16)
    ws_x = jnp.zeros((hp, sp), f32).at[:h, :s_num].set(w_s[h:]).astype(bf16)
    # pre-baked softmax mask: padded columns get -1e30 (their weights are zero)
    b_s = jnp.full((1, sp), -1e30, f32).at[0, :s_num].set(params["b_s"].astype(f32))

    # --- encoder: adj streamed only twice -------------------------------------
    t1 = _row_matmul(x_p, wb_cat, out_dtype=bf16, tm=tm)           # (np_, 2hp)
    t2 = _gcn_fused(adj_p, t1, w2, out_dtype=bf16, tm=tm, tk=tk)   # (np_, 2hp)
    z = _adj_matmul(adj_p, t2, out_dtype=bf16, tm=tm, tk=tk)       # (np_, 2hp)

    # split branches and fold S into the (guaranteed zero) padding column h
    s_pad = jnp.pad(S, (0, np_ - n)).astype(bf16)
    z_a_s = z[:, :hp].at[:, h].set(s_pad)
    z_x_s = z[:, hp:].at[:, h].set(s_pad)

    # --- heads -----------------------------------------------------------------
    a_pred = _pred_a(z_a_s, wz_a, b_a, out_dtype=a_pred_dtype, tm=tm, tn=tn)
    x_pred, s_agg = _heads(z_a_s, z_x_s, wz_rx, b_rx, ws_a, ws_x, b_s, tm=tm)

    return (a_pred[:n, :n].astype(jnp.float32),
            x_pred[:n, :f],
            s_agg[:n, :s_num])


# ----------------------------------------------------------------------------
# reference (plain JAX, f32) for a sanity check
# ----------------------------------------------------------------------------
def _reference_forward(X, adj, sen_idx, params, s_num):
    S = X[:, sen_idx].reshape(-1, 1)
    X_ns = X.at[:, sen_idx].set(0.0)

    def branch(wb, wm):
        hidden = jax.nn.relu(adj @ (X_ns @ wb))
        return adj @ (hidden @ wm)

    z_a = branch(params["w_base"], params["w_mean"])
    z_x = branch(params["w_base_x"], params["w_mean_x"])
    a_pred = jax.nn.sigmoid(jnp.concatenate([z_a, S], 1) @ params["w_a"]
                            + params["b_a"])
    x_pred = jnp.concatenate([z_x, S], 1) @ params["w_rx"] + params["b_rx"]
    s_agg = jax.nn.softmax(jnp.concatenate([z_a, z_x], 1) @ params["w_s"]
                           + params["b_s"], axis=1)
    return a_pred, x_pred, s_agg


# ----------------------------------------------------------------------------
# demo
# ----------------------------------------------------------------------------
def _make_case(key, n, f, h, s_num, sen_idx):
    ks = jax.random.split(key, 12)

    def glorot(k, shape):
        lim = jnp.sqrt(6.0 / (shape[0] + shape[1]))
        return jax.random.uniform(k, shape, jnp.float32, -lim, lim)

    X = jax.random.normal(ks[0], (n, f), jnp.float32)

    # symmetric ring + self loops, GCN-normalized (adj is a constructor input
    # of the PyTorch module, so this is just example data)
    idx = jnp.arange(n)
    A = jnp.zeros((n, n), jnp.float32)
    A = A.at[idx, (idx + 1) % n].set(1.0)
    A = A.at[(idx + 1) % n, idx].set(1.0)
    A = A + jnp.eye(n, dtype=jnp.float32)
    dinv = lax.rsqrt(A.sum(axis=1))
    adj = dinv[:, None] * A * dinv[None, :]

    params = dict(
        w_base=glorot(ks[1], (f, h)),
        w_mean=glorot(ks[2], (h, h)),
        w_base_x=glorot(ks[3], (f, h)),
        w_mean_x=glorot(ks[4], (h, h)),
        w_a=glorot(ks[5], (h + 1, n)),
        b_a=0.01 * jax.random.normal(ks[6], (n,), jnp.float32),
        w_rx=glorot(ks[7], (h + 1, f)),
        b_rx=0.01 * jax.random.normal(ks[8], (f,), jnp.float32),
        w_s=glorot(ks[9], (2 * h, s_num)),
        b_s=0.01 * jax.random.normal(ks[10], (s_num,), jnp.float32),
    )
    return X, adj, params


if __name__ == "__main__":
    key = jax.random.PRNGKey(0)
    k1, k2 = jax.random.split(key)

    # case 1: tile-aligned small shapes
    N, F, H, S_NUM, SEN_IDX = 128, 32, 16, 4, 0
    X, adj, params = _make_case(k1, N, F, H, S_NUM, SEN_IDX)
    a_pred, x_pred, s_agg_pred = cfda_forward(X, adj, SEN_IDX, params, s_num=S_NUM)
    jax.block_until_ready((a_pred, x_pred, s_agg_pred))
    assert a_pred.shape == (N, N)
    assert x_pred.shape == (N, F)
    assert s_agg_pred.shape == (N, S_NUM)
    ra, rx, rs = _reference_forward(X, adj, SEN_IDX, params, S_NUM)
    assert float(jnp.max(jnp.abs(a_pred - ra))) < 0.1
    assert float(jnp.max(jnp.abs(x_pred - rx))) < 0.1
    assert float(jnp.max(jnp.abs(s_agg_pred - rs))) < 0.1

    # case 2: awkward (non-multiple-of-128) shapes to exercise the padding path
    N2, F2, H2, S_NUM2, SEN_IDX2 = 200, 37, 20, 4, 3
    X2, adj2, params2 = _make_case(k2, N2, F2, H2, S_NUM2, SEN_IDX2)
    a2, x2, s2 = cfda_forward(X2, adj2, SEN_IDX2, params2, s_num=S_NUM2)
    jax.block_until_ready((a2, x2, s2))
    assert a2.shape == (N2, N2)
    assert x2.shape == (N2, F2)
    assert s2.shape == (N2, S_NUM2)
    ra2, rx2, rs2 = _reference_forward(X2, adj2, SEN_IDX2, params2, S_NUM2)
    assert float(jnp.max(jnp.abs(a2 - ra2))) < 0.1
    assert float(jnp.max(jnp.abs(x2 - rx2))) < 0.1
    assert float(jnp.max(jnp.abs(s2 - rs2))) < 0.1

    print("KERNEL_OK")
</pallas_src>

<mosaic_0001>
module attributes {stable_mosaic.version = 11 : i64} {
  func.func @_matmul_kernel(%arg0: i32, %arg1: memref<128x128xbf16, #tpu.memory_space<vmem>>, %arg2: memref<128x256xbf16, #tpu.memory_space<vmem>>, %arg3: memref<128x256xbf16, #tpu.memory_space<vmem>>) attributes {dimension_semantics = [#tpu.dimension_semantics<parallel>], iteration_bounds = array<i64: 1>, scalar_prefetch = 0 : i64, scratch_operands = 0 : i64, tpu.core_type = #tpu.core_type<tc>, window_params = [{transform_indices = @transform_0, window_bounds = array<i64: 128, 128>}, {pipeline_mode = #tpu.pipeline_mode<synchronous>, transform_indices = @transform_1, window_bounds = array<i64: 128, 256>}, {transform_indices = @transform_2, window_bounds = array<i64: 128, 256>}]} {
    %c0 = arith.constant 0 : index
    %c0_0 = arith.constant 0 : index
    %0 = vector.load %arg1[%c0, %c0_0] : memref<128x128xbf16, #tpu.memory_space<vmem>>, vector<128x128xbf16>
    %c0_1 = arith.constant 0 : index
    %c0_2 = arith.constant 0 : index
    %1 = vector.load %arg2[%c0_1, %c0_2] : memref<128x256xbf16, #tpu.memory_space<vmem>>, vector<128x256xbf16>
    %cst = arith.constant dense<0.000000e+00> : vector<128x256xf32>
    %2 = tpu.matmul %0, %1, %cst {dimension_numbers = #tpu.dot_dimension_numbers<[1], [0], [0], [1], [0, 0, 1, 1], [], []>} : vector<128x128xbf16>, vector<128x256xbf16>, vector<128x256xf32> -> vector<128x256xf32>
    %3 = arith.truncf %2 : vector<128x256xf32> to vector<128x256xbf16>
    %c0_3 = arith.constant 0 : index
    %c0_4 = arith.constant 0 : index
    %4 = vector.load %arg3[%c0_3, %c0_4] : memref<128x256xbf16, #tpu.memory_space<vmem>>, vector<128x256xbf16>
    tpu.vector_store %arg3[%c0_3, %c0_4], %3 {strides = array<i32>} : memref<128x256xbf16, #tpu.memory_space<vmem>>, vector<128x256xbf16>,
    return
  }
  func.func @transform_0(%arg0: i32) -> (i32, i32) {
    %c0_i32 = arith.constant 0 : i32
    %c0_i32_0 = arith.constant 0 : i32
    return %arg0, %c0_i32 : i32, i32
  }
  func.func @transform_1(%arg0: i32) -> (i32, i32) {
    %c0_i32 = arith.constant 0 : i32
    %c0_i32_0 = arith.constant 0 : i32
    %c0_i32_1 = arith.constant 0 : i32
    return %c0_i32, %c0_i32_0 : i32, i32
  }
  func.func @transform_2(%arg0: i32) -> (i32, i32) {
    %c0_i32 = arith.constant 0 : i32
    %c0_i32_0 = arith.constant 0 : i32
    return %arg0, %c0_i32 : i32, i32
  }
}

</mosaic_0001>

<bundles_post_ra>
// kernel: tpu_custom_call.1
= control target key start
LH: loop header
LB: loop body
LE: loop exit
PB: predicated region body
PF: predicated region fallthrough
CT: control target
= control target key end

     0   :  { %7 = vsyncpa [#allocation3], 0  ;;  %s612_s0 = inlined_call_operand.hbm [shape: bf16[128,128], index: 0, kind: input, shape index: {}]   ;;  %s613_s1 = inlined_call_operand.hbm [shape: bf16[128,256], index: 1, kind: input, shape index: {}]   ;;  %s614_s2 = inlined_call_operand.hbm [shape: bf16[128,256], index: 2, kind: output, shape index: {}]  }
   0x1   :  { %8 = vsyncpa [#allocation6], 0 }
   0x2   :  { %9 = vsyncpa [#allocation4], 0  ;;  %s14_s11 = sshll.u32 %s612_s0, 4  ;;  %s575_s12 = smov [#allocation2]   ;;  %s15_s11 = int_to_ptr.hbm [resolvable:$true] %s14_s11 }
   0x3   :  { %s16_s13 = sshll.u32 %s575_s12, 4  ;;  %s27_s16 = sshll.u32 %s613_s1, 4  ;;  %s17_s13 = int_to_ptr.vmem [resolvable:$true] %s16_s13  ;;  %s28_s16 = int_to_ptr.hbm [resolvable:$true] %s27_s16 }
   0x4   :  { %s576_s17 = smov 64   ;;  %s577_s18 = smov 4  }
   0x5   :  { %22 = dma.hbm_to_vmem [thread:$0]  %s15_s11, 1024, %s17_s13, [#allocation3], %s576_s17, %s576_s17, %s577_s18  }
   0x6   :  { %s578_s19 = smov [#allocation5]   ;;  %s579_s21 = smov 128  }
   0x7   :  { %s29_s20 = sshll.u32 %s578_s19, 4  ;;  %s580_s22 = smov 8   ;;  %s30_s20 = int_to_ptr.vmem [resolvable:$true] %s29_s20 }
   0x8   :  { %35 = dma.hbm_to_vmem [thread:$0]  %s28_s16, 2048, %s30_s20, [#allocation6], %s579_s21, %s579_s21, %s580_s22  }
   0x9   :  { %569 = dma.done.wait [#allocation3], 1024  }
   0xa   :  { %570 = vsyncadd [#allocation3], 4294966272 }
   0xb   :  { %571 = dma.done.wait [#allocation6], 2048  }
   0xc   :  { %572 = vsyncadd [#allocation6], 4294965248  ;;  %v444_v0 = vld [vmem:[#allocation5 + $0x70] sm:$0xf]  ;;  %v473_v1 = vld [vmem:[#allocation5 + $0x74] sm:$0xf0] }
   0xd   :  { %v472_v2 = vld [vmem:[#allocation5 + $0x74] sm:$0xf]  ;;  %v445_v3 = vor.u32 %v473_v1, %v444_v0  ;;  %v446_v4 = vld [vmem:[#allocation5 + $0x78] sm:$0xf0]  ;;  %v436_v5 = vld [vmem:[#allocation5 + $0x60] sm:$0xf] }
   0xe   :  { %v471_v6 = vld [vmem:[#allocation5 + $0x64] sm:$0xf0]  ;;  %v449_v7 = vor.u32 %v472_v2, %v446_v4  ;;  %v470_v8 = vld [vmem:[#allocation5 + $0x64] sm:$0xf]  ;;  %v438_v9 = vld [vmem:[#allocation5 + $0x68] sm:$0xf0] }
   0xf   :  { %204 = vmatpush.bf16.msra.mxu0 %v445_v3  ;;  %474 = vmatpush.bf16.msra.mxu2 %v445_v3  ;;  %v437_v10 = vor.u32 %v471_v6, %v436_v5  ;;  %v441_v11 = vor.u32 %v470_v8, %v438_v9  ;;  %v428_v12 = vld [vmem:[#allocation5 + $0x50] sm:$0xf]  ;;  %v469_v13 = vld [vmem:[#allocation5 + $0x54] sm:$0xf0]  ;;  %v468_v14 = vld [vmem:[#allocation5 + $0x54] sm:$0xf] }
  0x10   :  { %253 = vmatpush.bf16.msra.mxu1 %v449_v7  ;;  %482 = vmatpush.bf16.msra.mxu3 %v449_v7  ;;  %v430_v15 = vld [vmem:[#allocation5 + $0x58] sm:$0xf0]  ;;  %v429_v16 = vor.u32 %v469_v13, %v428_v12  ;;  %v420_v18 = vld [vmem:[#allocation5 + $0x40] sm:$0xf]  ;;  %v467_v19 = vld [vmem:[#allocation5 + $0x44] sm:$0xf0] }
  0x11   :  { %v433_v17 = vor.u32 %v468_v14, %v430_v15  ;;  %v466_v20 = vld [vmem:[#allocation5 + $0x44] sm:$0xf]  ;;  %v422_v21 = vld [vmem:[#allocation5 + $0x48] sm:$0xf0]  ;;  %v421_v22 = vor.u32 %v467_v19, %v420_v18  ;;  %v412_v24 = vld [vmem:[#allocation5 + $0x30] sm:$0xf] }
  0x12   :  { %v425_v23 = vor.u32 %v466_v20, %v422_v21  ;;  %v465_v25 = vld [vmem:[#allocation5 + $0x34] sm:$0xf0]  ;;  %v464_v26 = vld [vmem:[#allocation5 + $0x34] sm:$0xf]  ;;  %v414_v27 = vld [vmem:[#allocation5 + $0x38] sm:$0xf0] }
  0x13   :  { %205 = vmatpush.bf16.msra.mxu0 %v437_v10  ;;  %475 = vmatpush.bf16.msra.mxu2 %v437_v10  ;;  %v413_v28 = vor.u32 %v465_v25, %v412_v24  ;;  %v417_v29 = vor.u32 %v464_v26, %v414_v27  ;;  %v404_v30 = vld [vmem:[#allocation5 + $0x20] sm:$0xf]  ;;  %v463_v31 = vld [vmem:[#allocation5 + $0x24] sm:$0xf0]  ;;  %v462_v32 = vld [vmem:[#allocation5 + $0x24] sm:$0xf] }
  0x14   :  { %254 = vmatpush.bf16.msra.mxu1 %v441_v11  ;;  %483 = vmatpush.bf16.msra.mxu3 %v441_v11  ;;  %v406_v33 = vld [vmem:[#allocation5 + $0x28] sm:$0xf0]  ;;  %v405_v34 = vor.u32 %v463_v31, %v404_v30  ;;  %v396_v36 = vld [vmem:[#allocation5 + $0x10] sm:$0xf]  ;;  %v461_v37 = vld [vmem:[#allocation5 + $0x14] sm:$0xf0] }
  0x15   :  { %v409_v35 = vor.u32 %v462_v32, %v406_v33  ;;  %v460_v38 = vld [vmem:[#allocation5 + $0x14] sm:$0xf]  ;;  %v398_v39 = vld [vmem:[#allocation5 + $0x18] sm:$0xf0]  ;;  %v397_v40 = vor.u32 %v461_v37, %v396_v36  ;;  %v388_v42 = vld [vmem:[#allocation5] sm:$0xf] }
  0x16   :  { %v401_v41 = vor.u32 %v460_v38, %v398_v39  ;;  %v459_v43 = vld [vmem:[#allocation5 + $0x4] sm:$0xf0]  ;;  %v458_v44 = vld [vmem:[#allocation5 + $0x4] sm:$0xf]  ;;  %v390_v45 = vld [vmem:[#allocation5 + $0x8] sm:$0xf0] }
  0x17   :  { %206 = vmatpush.bf16.msra.mxu0 %v429_v16  ;;  %476 = vmatpush.bf16.msra.mxu2 %v429_v16  ;;  %v389_v46 = vor.u32 %v459_v43, %v388_v42  ;;  %v393_v47 = vor.u32 %v458_v44, %v390_v45  ;;  %v450_v48 = vld [vmem:[#allocation2] sm:$0xff]  ;;  %v451_v50 = vld [vmem:[#allocation2 + $0x8] sm:$0xff]  ;;  %v452_v52 = vld [vmem:[#allocation2 + $0x10] sm:$0xff]  ;;  %s581_s0 = smov [#allocation7]   ;;  %s340_s25 = sshll.u32 %s614_s2, 4  ;;  %s341_s25 = int_to_ptr.hbm [resolvable:$true] %s340_s25 }
  0x18   :  { %255 = vmatpush.bf16.msra.mxu1 %v433_v17  ;;  %484 = vmatpush.bf16.msra.mxu3 %v433_v17  ;;  %v454_v49 = vld [vmem:[#allocation2 + $0x20] sm:$0xff]  ;;  %v455_v51 = vld [vmem:[#allocation2 + $0x28] sm:$0xff]  ;;  %v456_v53 = vld [vmem:[#allocation2 + $0x30] sm:$0xff]  ;;  %s338_s1 = sshll.u32 %s581_s0, 4  ;;  %s339_s1 = int_to_ptr.vmem [resolvable:$true] %s338_s1 }
  0x19   :  { %v453_v54 = vld [vmem:[#allocation2 + $0x18] sm:$0xff] }
  0x1a   :  { %v457_v55 = vld [vmem:[#allocation2 + $0x38] sm:$0xff] }
  0x1b   :  { %207 = vmatpush.bf16.msra.mxu0 %v421_v22  ;;  %477 = vmatpush.bf16.msra.mxu2 %v421_v22 }
  0x1c   :  { %256 = vmatpush.bf16.msra.mxu1 %v425_v23  ;;  %485 = vmatpush.bf16.msra.mxu3 %v425_v23 }
  0x1f   :  { %208 = vmatpush.bf16.msra.mxu0 %v413_v28  ;;  %478 = vmatpush.bf16.msra.mxu2 %v413_v28 }
  0x20   :  { %257 = vmatpush.bf16.msra.mxu1 %v417_v29  ;;  %486 = vmatpush.bf16.msra.mxu3 %v417_v29 }
  0x23   :  { %209 = vmatpush.bf16.msra.mxu0 %v405_v34  ;;  %479 = vmatpush.bf16.msra.mxu2 %v405_v34 }
  0x24   :  { %258 = vmatpush.bf16.msra.mxu1 %v409_v35  ;;  %487 = vmatpush.bf16.msra.mxu3 %v409_v35 }
  0x27   :  { %210 = vmatpush.bf16.msra.mxu0 %v397_v40  ;;  %480 = vmatpush.bf16.msra.mxu2 %v397_v40 }
  0x28   :  { %259 = vmatpush.bf16.msra.mxu1 %v401_v41  ;;  %488 = vmatpush.bf16.msra.mxu3 %v401_v41 }
  0x2b   :  { %211 = vmatpush.bf16.msra.mxu0 %v389_v46  ;;  %481 = vmatpush.bf16.msra.mxu2 %v389_v46 }
  0x2c   :  { %260 = vmatpush.bf16.msra.mxu1 %v393_v47  ;;  %489 = vmatpush.bf16.msra.mxu3 %v393_v47 }
  0x2e   :  { %212 = vmatmul.bf16.vlgmr.msra.gmra.mxu0 %v450_v48  ;;  %232 = vmatmul.bf16.vlgmr.msra.gmra.mxu2 %v454_v49 }
  0x2f   :  { %261 = vmatmul.bf16.vlgmr.msra.gmra.mxu1 %v450_v48  ;;  %281 = vmatmul.bf16.vlgmr.msra.gmra.mxu3 %v454_v49 }
  0x3e   :  { %217 = vmatmul.bf16.gmra.mxu0 %v451_v50  ;;  %237 = vmatmul.bf16.gmra.mxu2 %v455_v51 }
  0x3f   :  { %266 = vmatmul.bf16.gmra.mxu1 %v451_v50  ;;  %286 = vmatmul.bf16.gmra.mxu3 %v455_v51 }
  0x4e   :  { %222 = vmatmul.bf16.gmra.mxu0 %v452_v52  ;;  %242 = vmatmul.bf16.gmra.mxu2 %v456_v53 }
  0x4f   :  { %271 = vmatmul.bf16.gmra.mxu1 %v452_v52  ;;  %291 = vmatmul.bf16.gmra.mxu3 %v456_v53 }
  0x5e   :  { %227 = vmatmul.bf16.gmra.mxu0 %v453_v54  ;;  %247 = vmatmul.bf16.gmra.mxu2 %v457_v55 }
  0x5f   :  { %276 = vmatmul.bf16.gmra.mxu1 %v453_v54  ;;  %296 = vmatmul.bf16.gmra.mxu3 %v457_v55 }
  0xab   :  { %v213_v56 = vpop.f32.mrf.mxu0 }
  0xac   :  { %v262_v57 = vpop.f32.mrf.mxu1 }
  0xad   :  { %v302_v58 = vpack.c.bf16 %v262_v57, %v213_v56 }
  0xaf   :  { %318 = vst [vmem:[#allocation7] sm:$0xff] %v302_v58 }
  0xb1   :  { %v233_v59 = vpop.f32.mrf.mxu2 }
  0xb2   :  { %v282_v60 = vpop.f32.mrf.mxu3 }
  0xb3   :  { %v310_v61 = vpack.c.bf16 %v282_v60, %v233_v59  ;;  %v215_v62 = vpop.f32.mrf.mxu0 }
  0xb4   :  { %v264_v63 = vpop.f32.mrf.mxu1 }
  0xb5   :  { %326 = vst [vmem:[#allocation7 + $0x40] sm:$0xff] %v310_v61  ;;  %v303_v0 = vpack.c.bf16 %v264_v63, %v215_v62 }
  0xb7   :  { %319 = vst [vmem:[#allocation7 + $0x8] sm:$0xff] %v303_v0 }
  0xb9   :  { %v235_v1 = vpop.f32.mrf.mxu2 }
  0xba   :  { %v284_v2 = vpop.f32.mrf.mxu3 }
  0xbb   :  { %v311_v3 = vpack.c.bf16 %v284_v2, %v235_v1  ;;  %v218_v4 = vpop.f32.mrf.mxu0 }
  0xbc   :  { %v267_v5 = vpop.f32.mrf.mxu1 }
  0xbd   :  { %327 = vst [vmem:[#allocation7 + $0x48] sm:$0xff] %v311_v3  ;;  %v304_v6 = vpack.c.bf16 %v267_v5, %v218_v4 }
  0xbf   :  { %320 = vst [vmem:[#allocation7 + $0x10] sm:$0xff] %v304_v6 }
  0xc1   :  { %v238_v7 = vpop.f32.mrf.mxu2 }
  0xc2   :  { %v287_v8 = vpop.f32.mrf.mxu3 }
  0xc3   :  { %v312_v9 = vpack.c.bf16 %v287_v8, %v238_v7  ;;  %v220_v10 = vpop.f32.mrf.mxu0 }
  0xc4   :  { %v269_v11 = vpop.f32.mrf.mxu1 }
  0xc5   :  { %328 = vst [vmem:[#allocation7 + $0x50] sm:$0xff] %v312_v9  ;;  %v305_v12 = vpack.c.bf16 %v269_v11, %v220_v10 }
  0xc7   :  { %321 = vst [vmem:[#allocation7 + $0x18] sm:$0xff] %v305_v12 }
  0xc9   :  { %v240_v13 = vpop.f32.mrf.mxu2 }
  0xca   :  { %v289_v14 = vpop.f32.mrf.mxu3 }
  0xcb   :  { %v313_v15 = vpack.c.bf16 %v289_v14, %v240_v13  ;;  %v223_v16 = vpop.f32.mrf.mxu0 }
  0xcc   :  { %v272_v17 = vpop.f32.mrf.mxu1 }
  0xcd   :  { %329 = vst [vmem:[#allocation7 + $0x58] sm:$0xff] %v313_v15  ;;  %v306_v18 = vpack.c.bf16 %v272_v17, %v223_v16 }
  0xcf   :  { %322 = vst [vmem:[#allocation7 + $0x20] sm:$0xff] %v306_v18 }
  0xd1   :  { %v243_v19 = vpop.f32.mrf.mxu2 }
  0xd2   :  { %v292_v20 = vpop.f32.mrf.mxu3 }
  0xd3   :  { %v314_v21 = vpack.c.bf16 %v292_v20, %v243_v19  ;;  %v225_v22 = vpop.f32.mrf.mxu0 }
  0xd4   :  { %v274_v23 = vpop.f32.mrf.mxu1 }
  0xd5   :  { %330 = vst [vmem:[#allocation7 + $0x60] sm:$0xff] %v314_v21  ;;  %v307_v24 = vpack.c.bf16 %v274_v23, %v225_v22 }
  0xd7   :  { %323 = vst [vmem:[#allocation7 + $0x28] sm:$0xff] %v307_v24 }
  0xd9   :  { %v245_v25 = vpop.f32.mrf.mxu2 }
  0xda   :  { %v294_v26 = vpop.f32.mrf.mxu3 }
  0xdb   :  { %v315_v27 = vpack.c.bf16 %v294_v26, %v245_v25  ;;  %v228_v28 = vpop.f32.mrf.mxu0 }
  0xdc   :  { %v277_v29 = vpop.f32.mrf.mxu1 }
  0xdd   :  { %331 = vst [vmem:[#allocation7 + $0x68] sm:$0xff] %v315_v27  ;;  %v308_v30 = vpack.c.bf16 %v277_v29, %v228_v28 }
  0xdf   :  { %324 = vst [vmem:[#allocation7 + $0x30] sm:$0xff] %v308_v30 }
  0xe1   :  { %v248_v31 = vpop.f32.mrf.mxu2 }
  0xe2   :  { %v297_v32 = vpop.f32.mrf.mxu3 }
  0xe3   :  { %v316_v33 = vpack.c.bf16 %v297_v32, %v248_v31  ;;  %v230_v34 = vpop.f32.mrf.mxu0 }
  0xe4   :  { %v279_v35 = vpop.f32.mrf.mxu1 }
  0xe5   :  { %332 = vst [vmem:[#allocation7 + $0x70] sm:$0xff] %v316_v33  ;;  %v309_v36 = vpack.c.bf16 %v279_v35, %v230_v34 }
  0xe7   :  { %325 = vst [vmem:[#allocation7 + $0x38] sm:$0xff] %v309_v36 }
  0xe9   :  { %v250_v37 = vpop.f32.mrf.mxu2 }
  0xea   :  { %v299_v38 = vpop.f32.mrf.mxu3 }
  0xeb   :  { %v317_v39 = vpack.c.bf16 %v299_v38, %v250_v37 }
  0xed   :  { %333 = vst [vmem:[#allocation7 + $0x78] sm:$0xff] %v317_v39 }
  0xee   :  { %346 = dma.vmem_to_hbm [thread:$0]  %s339_s1, 2048, %s341_s25, [#allocation4], %s579_s21, %s579_s21, %s580_s22  }
  0xef   :  { %573 = dma.done.wait [#allocation4], 2048  }
  0xf0   :  { %574 = vsyncadd [#allocation4], 4294965248 }
  0xf1   :  { %351 = vsyncpa [#allocation3], 1 }
  0xf2   :  { %352 = vsyncpa [#allocation6], 1 }
  0xf3   :  { %353 = vsyncpa [#allocation4], 1 }

</bundles_post_ra>
